<compile_context>
chip_gen: v7x
topology: tpu7x:2x2x1
jax: 0.10.0
libtpu: 0.0.40
codegen_flags: <defaults>
</compile_context>

<pallas_src>
import functools

import jax
import jax.numpy as jnp
from jax.experimental import pallas as pl
from jax.experimental.pallas import tpu as pltpu

_ACC_ROWS = 8   # sublane-aligned rows for the per-core partial-sum output


def _round_up(x, m):
    return ((x + m - 1) // m) * m


def _vmem_capacity_bytes():
    try:
        return int(pltpu.get_tpu_info().vmem_capacity_bytes)
    except Exception:
        try:
            kind = jax.devices()[0].device_kind.lower()
        except Exception:
            kind = ""
        return (64 if "v7" in kind else 128) * 1024 * 1024


def _num_tensorcores():
    # v7x has 2 TensorCores per chip; v5e/v6e have 1 (parallel split off there).
    try:
        kind = jax.devices()[0].device_kind.lower()
    except Exception:
        kind = ""
    return 2 if "v7" in kind else 1


def _sar_ce_kernel(logits_ref, labels_ref, out_ref, acc_ref, *, valid_rows, row_tile):
    """Accumulate sum(log p[label]) over one (row_tile, C) block of rows."""
    j = pl.program_id(1)

    @pl.when(j == 0)
    def _init():
        acc_ref[...] = jnp.zeros_like(acc_ref)

    x = logits_ref[...].astype(jnp.float32)                      # (rt, C) f32
    lbl = labels_ref[...]                                        # (rt, 1) int32

    # Numerically stable log-softmax pieces; full log-probs never materialized.
    m = jnp.max(x, axis=-1, keepdims=True)                       # (rt, 1)
    z = x - m
    lse = jnp.log(jnp.sum(jnp.exp(z), axis=-1, keepdims=True))   # (rt, 1)

    # One-hot gather of z at the label: lane iota (1, C) broadcast vs (rt, 1).
    col = jax.lax.broadcasted_iota(jnp.int32, (1, x.shape[-1]), 1)
    picked = jnp.sum(jnp.where(col == lbl, z, 0.0),
                     axis=-1, keepdims=True) - lse                # (rt, 1)

    # Mask: module's dropped last time step, ragged last tile, and any clamped
    # phantom tile from the per-core split (unclamped tile index => rows land
    # past valid_rows and contribute 0).
    tile_idx = pl.program_id(0) * pl.num_programs(1) + j
    row = tile_idx * row_tile + jax.lax.broadcasted_iota(jnp.int32, picked.shape, 0)
    contrib = jnp.where(row < valid_rows, picked, 0.0)

    acc_ref[...] += jnp.sum(contrib)

    @pl.when(j == pl.num_programs(1) - 1)
    def _finalize():
        out_ref[...] = acc_ref[...]


def sar_loss(logits_tbc, labels_bt, *, row_tile=None):
    """Pallas implementation of SARLoss.forward.

    logits_tbc: [T, B, C] float (any float dtype; promoted to f32 in-kernel)
    labels_bt:  [B, T]    int
    returns scalar float32 loss
    """
    T, B, C = logits_tbc.shape
    if T < 2:
        raise ValueError("SARLoss needs at least 2 time steps")
    valid_rows = (T - 1) * B                         # rows contributing to the mean

    itemsize = jnp.dtype(logits_tbc.dtype).itemsize
    sublane = 8 * max(1, 4 // itemsize)              # 8 rows (f32) / 16 rows (bf16)

    num_par = _num_tensorcores()
    vmem_cap = _vmem_capacity_bytes()

    # Live bytes per block row: double-buffered native-dtype logits +
    # double-buffered (lane-padded) labels + ~6 f32 C-wide intermediates.
    per_row_bytes = 2 * C * itemsize + 2 * 128 * 4 + 6 * C * 4
    budget = vmem_cap // 4                           # generous headroom

    if row_tile is None:
        cap_rows = max(sublane, budget // per_row_bytes)
        row_tile = min(cap_rows, _round_up(valid_rows, sublane))
        row_tile = max(sublane, (row_tile // sublane) * sublane)
        n_tiles = pl.cdiv(valid_rows, row_tile)
        # Balance the v7x 2-core split: prefer a tile count that divides evenly
        # so no core ever runs a clamped duplicate (masked) tile.
        if num_par > 1 and n_tiles % num_par != 0:
            rt = row_tile
            while rt > sublane:
                rt -= sublane
                if pl.cdiv(valid_rows, rt) % num_par == 0:
                    row_tile = rt
                    break
            n_tiles = pl.cdiv(valid_rows, row_tile)
    else:
        row_tile = max(sublane, _round_up(int(row_tile), sublane))
        n_tiles = pl.cdiv(valid_rows, row_tile)

    tiles_per_core = pl.cdiv(n_tiles, num_par)

    # Contiguous 2-D view of the logits in native dtype (free reshape, no copy).
    logits_2d = logits_tbc.reshape(T * B, C)

    # Labels: positional pairing with time-major flattened logits (exactly what
    # the module's reshape does); padded so every label DMA is in-bounds.
    labels_flat = labels_bt[:, 1:].astype(jnp.int32).reshape(-1)
    pad = n_tiles * row_tile - valid_rows
    if pad > 0:
        labels_flat = jnp.pad(labels_flat, (0, pad))
    labels_2d = labels_flat.reshape(-1, 1)

    def _block_map(p, j):
        # Clamp so phantom tiles (odd split fallback) still issue in-bounds
        # DMAs; their contribution is masked in-kernel via the unclamped index.
        return (jnp.minimum(p * tiles_per_core + j, n_tiles - 1), 0)

    # Explicit scoped-VMEM limit sized from the real working set.
    vmem_need = row_tile * per_row_bytes + (1 << 20)
    vmem_limit = int(min(0.9 * vmem_cap, max(2 * vmem_need, 16 * 1024 * 1024)))

    kernel = functools.partial(_sar_ce_kernel,
                               valid_rows=valid_rows, row_tile=row_tile)

    partials = pl.pallas_call(
        kernel,
        out_shape=jax.ShapeDtypeStruct((num_par * _ACC_ROWS, 1), jnp.float32),
        grid_spec=pltpu.PrefetchScalarGridSpec(
            num_scalar_prefetch=0,
            grid=(num_par, tiles_per_core),
            in_specs=[
                pl.BlockSpec((row_tile, C), _block_map),   # logits, native dtype
                pl.BlockSpec((row_tile, 1), _block_map),   # labels
            ],
            out_specs=pl.BlockSpec((_ACC_ROWS, 1), lambda p, j: (p, 0)),
            scratch_shapes=[pltpu.VMEM((_ACC_ROWS, 1), jnp.float32)],
        ),
        compiler_params=pltpu.CompilerParams(
            dimension_semantics=("parallel", "arbitrary"),
            vmem_limit_bytes=vmem_limit),
    )(logits_2d, labels_2d)

    per_core = partials.reshape(num_par, _ACC_ROWS)[:, 0]     # per-core partial sums
    return -jnp.sum(per_core) / jnp.float32(valid_rows)


def _ref_sar_loss(logits_tbc, labels_bt):
    """Pure-JAX reference (exact module glue) for validation."""
    T, B, C = logits_tbc.shape
    logits = logits_tbc[:-1, :, :].reshape(-1, C).astype(jnp.float32)
    labels = labels_bt[:, 1:].reshape(-1)
    logp = jax.nn.log_softmax(logits, axis=-1)
    nll = -jnp.take_along_axis(logp, labels[:, None].astype(jnp.int32), axis=-1)[:, 0]
    return jnp.mean(nll)


if __name__ == "__main__":
    # small shapes: seq T=8, batch B=2, num_classes C=32
    T, B, C = 8, 2, 32
    key = jax.random.PRNGKey(0)
    k1, k2 = jax.random.split(key)
    logits = jax.random.normal(k1, (T, B, C), dtype=jnp.float32)
    labels = jax.random.randint(k2, (B, T), 0, C, dtype=jnp.int32)

    ref = _ref_sar_loss(logits, labels)

    # auto row tiling (single sublane-aligned tile for this shape)
    loss = sar_loss(logits, labels)
    jax.block_until_ready(loss)
    assert jnp.allclose(loss, ref, atol=1e-5, rtol=1e-5), (loss, ref)

    # multi-tile path: ragged last tile + accumulation across grid steps
    loss_tiled = sar_loss(logits, labels, row_tile=8)
    jax.block_until_ready(loss_tiled)
    assert jnp.allclose(loss_tiled, ref, atol=1e-5, rtol=1e-5), (loss_tiled, ref)

    # native-dtype (bf16) path: no wrapper-side f32 copy, 16-row sublane tiles
    logits_bf16 = logits.astype(jnp.bfloat16)
    loss_bf16 = sar_loss(logits_bf16, labels)
    jax.block_until_ready(loss_bf16)
    ref_bf16 = _ref_sar_loss(logits_bf16.astype(jnp.float32), labels)
    assert jnp.allclose(loss_bf16, ref_bf16, atol=1e-3, rtol=1e-3), (loss_bf16, ref_bf16)

    print("KERNEL_OK")
</pallas_src>

<mosaic_0001>
module attributes {stable_mosaic.version = 11 : i64} {
  func.func @_sar_ce_kernel(%arg0: i32, %arg1: i32, %arg2: memref<16x32xf32, #tpu.memory_space<vmem>>, %arg3: memref<16x1xi32, #tpu.memory_space<vmem>>, %arg4: memref<8x1xf32, #tpu.memory_space<vmem>>, %arg5: memref<8x1xf32, #tpu.memory_space<vmem>>) attributes {dimension_semantics = [#tpu.dimension_semantics<parallel>, #tpu.dimension_semantics<arbitrary>], iteration_bounds = array<i64: 1, 1>, scalar_prefetch = 0 : i64, scratch_operands = 1 : i64, tpu.core_type = #tpu.core_type<tc>, window_params = [{transform_indices = @transform_0, window_bounds = array<i64: 16, 32>}, {transform_indices = @transform_1, window_bounds = array<i64: 16, 1>}, {transform_indices = @transform_2, window_bounds = array<i64: 8, 1>}]} {
    %c0_i32 = arith.constant 0 : i32
    %0 = arith.cmpi eq, %arg1, %c0_i32 : i32
    %1 = arith.extui %0 : i1 to i32
    %c0_i32_0 = arith.constant 0 : i32
    %2 = arith.cmpi ne, %1, %c0_i32_0 : i32
    scf.if %2 {
      %cst_15 = arith.constant 0.000000e+00 : f32
      %43 = vector.broadcast %cst_15 : f32 to vector<8x1xf32>
      %c0_16 = arith.constant 0 : index
      %c0_17 = arith.constant 0 : index
      %44 = vector.load %arg5[%c0_16, %c0_17] : memref<8x1xf32, #tpu.memory_space<vmem>>, vector<8x1xf32>
      tpu.vector_store %arg5[%c0_16, %c0_17], %43 {strides = array<i32>} : memref<8x1xf32, #tpu.memory_space<vmem>>, vector<8x1xf32>,
    } else {
    }
    %c0 = arith.constant 0 : index
    %c0_1 = arith.constant 0 : index
    %3 = vector.load %arg2[%c0, %c0_1] : memref<16x32xf32, #tpu.memory_space<vmem>>, vector<16x32xf32>
    %c0_2 = arith.constant 0 : index
    %c0_3 = arith.constant 0 : index
    %4 = vector.load %arg3[%c0_2, %c0_3] : memref<16x1xi32, #tpu.memory_space<vmem>>, vector<16x1xi32>
    %cst = arith.constant dense<0xFF800000> : vector<16xf32>
    %5 = vector.multi_reduction <maximumf>, %3, %cst [1] : vector<16x32xf32> to vector<16xf32>
    %6 = vector.shape_cast %5 : vector<16xf32> to vector<16x1xf32>
    %7 = vector.broadcast %6 : vector<16x1xf32> to vector<16x32xf32>
    %8 = arith.subf %3, %7 : vector<16x32xf32>
    %9 = math.exp %8 : vector<16x32xf32>
    %cst_4 = arith.constant dense<0.000000e+00> : vector<16xf32>
    %10 = vector.multi_reduction <add>, %9, %cst_4 [1] : vector<16x32xf32> to vector<16xf32>
    %11 = vector.shape_cast %10 : vector<16xf32> to vector<16x1xf32>
    %12 = math.log %11 : vector<16x1xf32>
    %13 = tpu.iota {dimensions = array<i32: 1>} : vector<1x32xi32>
    %14 = vector.broadcast %13 : vector<1x32xi32> to vector<16x32xi32>
    %15 = vector.broadcast %4 : vector<16x1xi32> to vector<16x32xi32>
    %16 = arith.cmpi eq, %14, %15 : vector<16x32xi32>
    %cst_5 = arith.constant 0.000000e+00 : f32
    %17 = vector.broadcast %cst_5 : f32 to vector<16x32xf32>
    %18 = arith.select %16, %8, %17 : vector<16x32xi1>, vector<16x32xf32>
    %cst_6 = arith.constant dense<0.000000e+00> : vector<16xf32>
    %19 = vector.multi_reduction <add>, %18, %cst_6 [1] : vector<16x32xf32> to vector<16xf32>
    %20 = vector.shape_cast %19 : vector<16xf32> to vector<16x1xf32>
    %21 = arith.subf %20, %12 : vector<16x1xf32>
    %c1_i32 = arith.constant 1 : i32
    %22 = arith.muli %arg0, %c1_i32 : i32
    %23 = arith.addi %22, %arg1 : i32
    %c16_i32 = arith.constant 16 : i32
    %24 = arith.muli %23, %c16_i32 : i32
    %25 = tpu.iota {dimensions = array<i32: 0>} : vector<16x1xi32>
    %26 = vector.broadcast %24 : i32 to vector<16x1xi32>
    %27 = arith.addi %26, %25 : vector<16x1xi32>
    %c14_i32 = arith.constant 14 : i32
    %28 = vector.broadcast %c14_i32 : i32 to vector<16x1xi32>
    %29 = arith.cmpi slt, %27, %28 : vector<16x1xi32>
    %cst_7 = arith.constant 0.000000e+00 : f32
    %30 = vector.broadcast %cst_7 : f32 to vector<16x1xf32>
    %31 = arith.select %29, %21, %30 : vector<16x1xi1>, vector<16x1xf32>
    %c0_8 = arith.constant 0 : index
    %c0_9 = arith.constant 0 : index
    %32 = vector.load %arg5[%c0_8, %c0_9] : memref<8x1xf32, #tpu.memory_space<vmem>>, vector<8x1xf32>
    %33 = vector.shape_cast %31 : vector<16x1xf32> to vector<1x16x1xf32>
    %cst_10 = arith.constant dense<0.000000e+00> : vector<1xf32>
    %34 = vector.multi_reduction <add>, %33, %cst_10 [1, 2] : vector<1x16x1xf32> to vector<1xf32>
    %35 = vector.shape_cast %34 : vector<1xf32> to vector<1x1x1xf32>
    %36 = vector.extract %35[0, 0, 0] : f32 from vector<1x1x1xf32>
    %37 = vector.broadcast %36 : f32 to vector<8x1xf32>
    %38 = arith.addf %32, %37 : vector<8x1xf32>
    %c0_11 = arith.constant 0 : index
    %c0_12 = arith.constant 0 : index
    %39 = vector.load %arg5[%c0_11, %c0_12] : memref<8x1xf32, #tpu.memory_space<vmem>>, vector<8x1xf32>
    tpu.vector_store %arg5[%c0_11, %c0_12], %38 {strides = array<i32>} : memref<8x1xf32, #tpu.memory_space<vmem>>, vector<8x1xf32>,
    %c0_i32_13 = arith.constant 0 : i32
    %40 = arith.cmpi eq, %arg1, %c0_i32_13 : i32
    %41 = arith.extui %40 : i1 to i32
    %c0_i32_14 = arith.constant 0 : i32
    %42 = arith.cmpi ne, %41, %c0_i32_14 : i32
    scf.if %42 {
      %c0_15 = arith.constant 0 : index
      %c0_16 = arith.constant 0 : index
      %43 = vector.load %arg5[%c0_15, %c0_16] : memref<8x1xf32, #tpu.memory_space<vmem>>, vector<8x1xf32>
      %c0_17 = arith.constant 0 : index
      %c0_18 = arith.constant 0 : index
      %44 = vector.load %arg4[%c0_17, %c0_18] : memref<8x1xf32, #tpu.memory_space<vmem>>, vector<8x1xf32>
      tpu.vector_store %arg4[%c0_17, %c0_18], %43 {strides = array<i32>} : memref<8x1xf32, #tpu.memory_space<vmem>>, vector<8x1xf32>,
    } else {
    }
    return
  }
  func.func @transform_0(%arg0: i32, %arg1: i32) -> (i32, i32) {
    %c1_i32 = arith.constant 1 : i32
    %0 = arith.muli %arg0, %c1_i32 : i32
    %1 = arith.addi %0, %arg1 : i32
    %c0_i32 = arith.constant 0 : i32
    %2 = arith.minsi %1, %c0_i32 : i32
    %c0_i32_0 = arith.constant 0 : i32
    %c0_i32_1 = arith.constant 0 : i32
    return %2, %c0_i32_0 : i32, i32
  }
  func.func @transform_1(%arg0: i32, %arg1: i32) -> (i32, i32) {
    %c1_i32 = arith.constant 1 : i32
    %0 = arith.muli %arg0, %c1_i32 : i32
    %1 = arith.addi %0, %arg1 : i32
    %c0_i32 = arith.constant 0 : i32
    %2 = arith.minsi %1, %c0_i32 : i32
    %c0_i32_0 = arith.constant 0 : i32
    %c0_i32_1 = arith.constant 0 : i32
    return %2, %c0_i32_0 : i32, i32
  }
  func.func @transform_2(%arg0: i32, %arg1: i32) -> (i32, i32) {
    %c0_i32 = arith.constant 0 : i32
    %c0_i32_0 = arith.constant 0 : i32
    return %arg0, %c0_i32 : i32, i32
  }
}

</mosaic_0001>

<bundles_post_ra>
// kernel: tpu_custom_call.1
= control target key start
LH: loop header
LB: loop body
LE: loop exit
PB: predicated region body
PF: predicated region fallthrough
CT: control target
= control target key end

     0   :  { %vm85_vm0 = vcmask 261120   ;;  %v192_v2 = vmov 0   ;;  %v108_v12 = vlaneseq  ;;  %vm79_vm4 = vcmask 7168   ;;  %s235_s0 = inlined_call_operand.vmem [shape: f32[16,32], index: 0, kind: input, shape index: {}]   ;;  %s236_s1 = inlined_call_operand.vmem [shape: s32[16,1], index: 1, kind: input, shape index: {}]   ;;  %s237_s2 = inlined_call_operand.vmem [shape: f32[8,1], index: 2, kind: output, shape index: {}]  }
   0x1   :  { %v82_v0 = vld [vmem:[%s235_s0 + $0x8] sm:$0xff]  ;;  %v81_v1 = vld [vmem:[%s235_s0] sm:$0xff]  ;;  %182 = vset.pattern.permute.xlu1 %v192_v2  ;;  %183 = vset.pattern.permute.xlu0 %v192_v2  ;;  %v193_v41 = vmov 0.0  }
   0x2   :  { %v84_v3 = vld [vmem:[%s236_s1 + $0x8] sm:$0xff]  ;;  %v89_v4 = vsel %vm85_vm0, %v82_v0, -inf  ;;  %v83_v5 = vld [vmem:[%s236_s1] sm:$0xff]  ;;  %v86_v6 = vsel %vm85_vm0, %v81_v1, -inf  ;;  %v109_v15 = vand.u32 127, %v108_v12  ;;  %v131_v27 = vshrl.u32 %v108_v12, 7 }
   0x3   :  { %114 = vperm.xlu1 %182, %v84_v3   ;;  %90 = vmax.xlane.f32.xlu0 %v89_v4  ;;  %80 = vst.msk [vmem:[#allocation2] sm:$0xff] %vm79_vm4, %v193_v41 }
   0x4   :  { %v132_v28 = vadd.s32 8, %v131_v27 }
   0x6   :  { %vm137_vm3 = vcmp.lt.s32.totalorder %v132_v28, 14 }
   0x7   :  { %111 = vperm.xlu1 %182, %v83_v5   ;;  %87 = vmax.xlane.f32.xlu0 %v86_v6 }
   0xa   :  { %v140_v49 = vld [vmem:[#allocation2] sm:$0xff] }
  0x82   :  { %v115_v14 = vpop.permute.xlu1 %114 }
  0x83   :  { %vm117_vm1 = vcmp.eq.s32.totalorder %v109_v15, %v115_v14 }
  0x86   :  { %v112_v17 = vpop.permute.xlu1 %111 }
  0x87   :  { %vm116_vm2 = vcmp.eq.s32.totalorder %v109_v15, %v112_v17 }
  0x90   :  { %v91_v7 = vpop.xlane.xlu0 %90 }
  0x91   :  { %v93_v8 = vsub.f32 %v82_v0, %v91_v7 }
  0x93   :  { %v96_v9 = vmul.f32 1.442695, %v93_v8  ;;  %v119_v19 = vsel %vm117_vm1, %v93_v8, 0.0 }
  0x94   :  { %v88_v10 = vpop.xlane.xlu0 %87  ;;  %v123_v21 = vsel %vm85_vm0, %v119_v19, 0.0 }
  0x95   :  { %184 = vpow2.f32 %v96_v9  ;;  %v92_v11 = vsub.f32 %v81_v1, %v88_v10 }
  0x97   :  { %v94_v13 = vmul.f32 1.442695, %v92_v11  ;;  %v118_v23 = vsel %vm116_vm2, %v92_v11, 0.0 }
  0x98   :  { %v120_v24 = vsel %vm85_vm0, %v118_v23, 0.0 }
  0x99   :  { %186 = vpow2.f32 %v94_v13 }
  0x9f   :  { %v185_v16 = vpop.eup %184 }
  0xa0   :  { %v101_v18 = vsel %vm85_vm0, %v185_v16, 0.0 }
  0xa1   :  { %102 = vadd.xlane.f32.xlu0 %v101_v18 }
  0xa3   :  { %v187_v20 = vpop.eup %186 }
  0xa4   :  { %v98_v22 = vsel %vm85_vm0, %v187_v20, 0.0 }
  0xa5   :  { %124 = vadd.xlane.f32.xlu0 %v123_v21  ;;  %99 = vadd.xlane.f32.xlu1 %v98_v22 }
  0xa9   :  { %121 = vadd.xlane.f32.xlu0 %v120_v24 }
 0x12e   :  { %v103_v25 = vpop.xlane.xlu0 %102 }
 0x12f   :  { %188 = vlog2.f32 %v103_v25 }
 0x132   :  { %v100_v26 = vpop.xlane.xlu1 %99  ;;  %v125_v30 = vpop.xlane.xlu0 %124 }
 0x133   :  { %190 = vlog2.f32 %v100_v26 }
 0x136   :  { %v122_v36 = vpop.xlane.xlu0 %121 }
 0x139   :  { %v189_v29 = vpop.eup %188 }
 0x13a   :  { %v107_v31 = vmul.f32 0.6931472, %v189_v29 }
 0x13c   :  { %v127_v32 = vsub.f32 %v125_v30, %v107_v31 }
 0x13d   :  { %v191_v33 = vpop.eup %190 }
 0x13e   :  { %v105_v34 = vmul.f32 0.6931472, %v191_v33  ;;  %v139_v35 = vsel %vm137_vm3, %v127_v32, 0.0 }
 0x13f   :  { %v143_v39 = vsel %vm79_vm4, %v139_v35, 0.0 }
 0x140   :  { %v126_v37 = vsub.f32 %v122_v36, %v105_v34 }
 0x142   :  { %v142_v38 = vsel %vm79_vm4, %v126_v37, 0.0 }
 0x143   :  { %v144_v40 = vadd.f32 %v143_v39, %v142_v38 }
 0x145   :  { %145 = vadd.xlane.f32.xlu0 %v144_v40 }
 0x1d2   :  { %v146_v42 = vpop.xlane.xlu0 %145 }
 0x1d3   :  { %v147_v43 = vrot.slane %v146_v42, 4 }
 0x1d5   :  { %v148_v44 = vadd.f32 %v147_v43, %v146_v42 }
 0x1d7   :  { %v149_v45 = vrot.slane %v148_v44, 2 }
 0x1d9   :  { %v150_v46 = vadd.f32 %v149_v45, %v148_v44 }
 0x1db   :  { %v151_v47 = vrot.slane %v150_v46, 1 }
 0x1dd   :  { %v152_v48 = vadd.f32 %v151_v47, %v150_v46 }
 0x1df   :  { %178 = vpush %v152_v48 }
 0x210   :  { %s179_s0 = spop %178 }
 0x211   :  { %v154_v50 = vstv %s179_s0 }
 0x212   :  { %v155_v51 = vadd.f32 %v154_v50, %v140_v49 }
 0x214   :  { %156 = vst.msk [vmem:[#allocation2] sm:$0xff] %vm79_vm4, %v155_v51 }
 0x21b   :  { %v160_v52 = vld [vmem:[#allocation2] sm:$0xff] }
 0x21c   :  { %161 = vst.msk [vmem:[%s237_s2] sm:$0xff] %vm79_vm4, %v160_v52 }

</bundles_post_ra>
